<compile_context>
chip_gen: v6e
topology: v6e:2x2x1
jax: 0.10.0
libtpu: 0.0.40
codegen_flags: <defaults>
</compile_context>

<pallas_src>
import jax
import jax.numpy as jnp
from jax.experimental import pallas as pl
from jax.experimental.pallas import tpu as pltpu

IN_F, HID_F, OUT_F = 6, 16, 4   # logical feature sizes (Linear(6->16), Linear(16->4))
HID_PAD = 128                   # hidden dim padded to one full lane tile


def mlp_kernel(x_ref, w1_ref, b1_ref, w2_ref, b2_ref, o_ref):
    # Hidden layer: relu(x @ W1 + b1); x block is (tile_b, 6), W1 is (6, 128).
    h = jnp.dot(x_ref[...], w1_ref[...], preferred_element_type=jnp.float32)
    h = jnp.maximum(h + b1_ref[...], 0.0)        # b1 (1,128) -> lane broadcast
    # Output layer: (tile_b, 128) @ (128, 4) + (1, 4) -> narrow 4-lane output.
    y = jnp.dot(h, w2_ref[...], preferred_element_type=jnp.float32)
    o_ref[...] = (y + b2_ref[...]).astype(o_ref.dtype)


def _round_up(n, m):
    return ((n + m - 1) // m) * m


def fully_model_forward(x, w1, b1, w2, b2, *, tile_b=8192):
    """x: (B, 6) f32; w1: (6,16); b1: (1,16); w2: (16,4); b2: (1,4) -> (B, 4)."""
    B = x.shape[0]
    B8 = _round_up(B, 8)
    # Batch tile: always a multiple of 8 (sublane constraint), no larger than
    # the rounded batch, and capped near half the batch when possible so the
    # parallel axis has >= 2 steps (keeps both v7x TensorCores busy).
    tile = _round_up(max(8, int(tile_b)), 8)
    tile = min(tile, B8)
    if B8 >= 16:
        tile = max(8, min(tile, _round_up(B8 // 2, 8)))
    n_tiles = pl.cdiv(B, tile)

    # Only the tiny weights get padded (one-off, exact: pads contribute 0).
    w1_p = jnp.zeros((IN_F, HID_PAD), jnp.float32).at[:, :HID_F].set(w1)
    b1_p = jnp.zeros((1, HID_PAD), jnp.float32).at[:, :HID_F].set(b1)
    w2_p = jnp.zeros((HID_PAD, OUT_F), jnp.float32).at[:HID_F, :].set(w2)
    b2_p = b2.reshape(1, OUT_F).astype(jnp.float32)

    return pl.pallas_call(
        mlp_kernel,
        out_shape=jax.ShapeDtypeStruct((B, OUT_F), jnp.float32),
        grid=(n_tiles,),
        in_specs=[
            pl.BlockSpec((tile, IN_F), lambda i: (i, 0)),      # x: batch-tiled, unpadded
            pl.BlockSpec((IN_F, HID_PAD), lambda i: (0, 0)),   # W1: VMEM-resident
            pl.BlockSpec((1, HID_PAD), lambda i: (0, 0)),      # b1: VMEM-resident
            pl.BlockSpec((HID_PAD, OUT_F), lambda i: (0, 0)),  # W2: VMEM-resident
            pl.BlockSpec((1, OUT_F), lambda i: (0, 0)),        # b2: VMEM-resident
        ],
        out_specs=pl.BlockSpec((tile, OUT_F), lambda i: (i, 0)),
        compiler_params=pltpu.CompilerParams(
            dimension_semantics=("parallel",),   # v7x shards batch over 2 TCs
        ),
    )(x, w1_p, b1_p, w2_p, b2_p)


def init_params(key):
    # Deterministic init mimicking nn.Linear's U(-1/sqrt(fan_in), 1/sqrt(fan_in)).
    k1, k2, k3, k4 = jax.random.split(key, 4)
    bound1 = 1.0 / jnp.sqrt(6.0)
    bound2 = 1.0 / jnp.sqrt(16.0)
    w1 = jax.random.uniform(k1, (IN_F, HID_F), jnp.float32, -bound1, bound1)
    b1 = jax.random.uniform(k2, (1, HID_F), jnp.float32, -bound1, bound1)
    w2 = jax.random.uniform(k3, (HID_F, OUT_F), jnp.float32, -bound2, bound2)
    b2 = jax.random.uniform(k4, (1, OUT_F), jnp.float32, -bound2, bound2)
    return w1, b1, w2, b2


def _reference(x, w1, b1, w2, b2):
    return jnp.maximum(x @ w1 + b1, 0.0) @ w2 + b2


if __name__ == "__main__":
    key = jax.random.PRNGKey(0)
    k_x, k_x2, k_p = jax.random.split(key, 3)
    w1, b1, w2, b2 = init_params(k_p)

    # Small-batch check (single tile, exact block fit).
    B = 8
    x = jax.random.normal(k_x, (B, IN_F), jnp.float32)
    out = jax.block_until_ready(fully_model_forward(x, w1, b1, w2, b2))
    ref = _reference(x, w1, b1, w2, b2)
    assert out.shape == (B, OUT_F)
    assert jnp.allclose(out, ref, atol=1e-5, rtol=1e-5)

    # Multi-tile check (ragged last tile on both x and the output, >=2 grid steps).
    B2 = 300
    x2 = jax.random.normal(k_x2, (B2, IN_F), jnp.float32)
    out2 = jax.block_until_ready(
        fully_model_forward(x2, w1, b1, w2, b2, tile_b=128))
    ref2 = _reference(x2, w1, b1, w2, b2)
    assert out2.shape == (B2, OUT_F)
    assert jnp.allclose(out2, ref2, atol=1e-5, rtol=1e-5)

    print("KERNEL_OK")
</pallas_src>

<mosaic_0001>
module attributes {stable_mosaic.version = 11 : i64} {
  func.func @mlp_kernel(%arg0: i32, %arg1: memref<8x6xf32, #tpu.memory_space<vmem>>, %arg2: memref<6x128xf32, #tpu.memory_space<vmem>>, %arg3: memref<1x128xf32, #tpu.memory_space<vmem>>, %arg4: memref<128x4xf32, #tpu.memory_space<vmem>>, %arg5: memref<1x4xf32, #tpu.memory_space<vmem>>, %arg6: memref<8x4xf32, #tpu.memory_space<vmem>>) attributes {dimension_semantics = [#tpu.dimension_semantics<parallel>], iteration_bounds = array<i64: 1>, scalar_prefetch = 0 : i64, scratch_operands = 0 : i64, tpu.core_type = #tpu.core_type<tc>, window_params = [{transform_indices = @transform_0, window_bounds = array<i64: 8, 6>}, {pipeline_mode = #tpu.pipeline_mode<synchronous>, transform_indices = @transform_1, window_bounds = array<i64: 6, 128>}, {pipeline_mode = #tpu.pipeline_mode<synchronous>, transform_indices = @transform_2, window_bounds = array<i64: 1, 128>}, {pipeline_mode = #tpu.pipeline_mode<synchronous>, transform_indices = @transform_3, window_bounds = array<i64: 128, 4>}, {pipeline_mode = #tpu.pipeline_mode<synchronous>, transform_indices = @transform_4, window_bounds = array<i64: 1, 4>}, {transform_indices = @transform_5, window_bounds = array<i64: 8, 4>}]} {
    %c0 = arith.constant 0 : index
    %c0_0 = arith.constant 0 : index
    %0 = vector.load %arg1[%c0, %c0_0] : memref<8x6xf32, #tpu.memory_space<vmem>>, vector<8x6xf32>
    %c0_1 = arith.constant 0 : index
    %c0_2 = arith.constant 0 : index
    %1 = vector.load %arg2[%c0_1, %c0_2] : memref<6x128xf32, #tpu.memory_space<vmem>>, vector<6x128xf32>
    %cst = arith.constant dense<0.000000e+00> : vector<8x128xf32>
    %2 = tpu.matmul %0, %1, %cst {dimension_numbers = #tpu.dot_dimension_numbers<[1], [0], [0], [1], [0, 0, 1, 1], [], []>} : vector<8x6xf32>, vector<6x128xf32>, vector<8x128xf32> -> vector<8x128xf32>
    %c0_3 = arith.constant 0 : index
    %c0_4 = arith.constant 0 : index
    %3 = vector.load %arg3[%c0_3, %c0_4] : memref<1x128xf32, #tpu.memory_space<vmem>>, vector<1x128xf32>
    %4 = vector.broadcast %3 : vector<1x128xf32> to vector<8x128xf32>
    %5 = arith.addf %2, %4 : vector<8x128xf32>
    %cst_5 = arith.constant 0.000000e+00 : f32
    %6 = vector.broadcast %cst_5 : f32 to vector<8x128xf32>
    %7 = arith.maximumf %5, %6 : vector<8x128xf32>
    %c0_6 = arith.constant 0 : index
    %c0_7 = arith.constant 0 : index
    %8 = vector.load %arg4[%c0_6, %c0_7] : memref<128x4xf32, #tpu.memory_space<vmem>>, vector<128x4xf32>
    %cst_8 = arith.constant dense<0.000000e+00> : vector<8x4xf32>
    %9 = tpu.matmul %7, %8, %cst_8 {dimension_numbers = #tpu.dot_dimension_numbers<[1], [0], [0], [1], [0, 0, 1, 1], [], []>} : vector<8x128xf32>, vector<128x4xf32>, vector<8x4xf32> -> vector<8x4xf32>
    %c0_9 = arith.constant 0 : index
    %c0_10 = arith.constant 0 : index
    %10 = vector.load %arg5[%c0_9, %c0_10] : memref<1x4xf32, #tpu.memory_space<vmem>>, vector<1x4xf32>
    %11 = vector.broadcast %10 : vector<1x4xf32> to vector<8x4xf32>
    %12 = arith.addf %9, %11 : vector<8x4xf32>
    %c0_11 = arith.constant 0 : index
    %c0_12 = arith.constant 0 : index
    %13 = vector.load %arg6[%c0_11, %c0_12] : memref<8x4xf32, #tpu.memory_space<vmem>>, vector<8x4xf32>
    tpu.vector_store %arg6[%c0_11, %c0_12], %12 {strides = array<i32>} : memref<8x4xf32, #tpu.memory_space<vmem>>, vector<8x4xf32>,
    return
  }
  func.func @transform_0(%arg0: i32) -> (i32, i32) {
    %c0_i32 = arith.constant 0 : i32
    %c0_i32_0 = arith.constant 0 : i32
    return %arg0, %c0_i32 : i32, i32
  }
  func.func @transform_1(%arg0: i32) -> (i32, i32) {
    %c0_i32 = arith.constant 0 : i32
    %c0_i32_0 = arith.constant 0 : i32
    %c0_i32_1 = arith.constant 0 : i32
    return %c0_i32, %c0_i32_0 : i32, i32
  }
  func.func @transform_2(%arg0: i32) -> (i32, i32) {
    %c0_i32 = arith.constant 0 : i32
    %c0_i32_0 = arith.constant 0 : i32
    %c0_i32_1 = arith.constant 0 : i32
    return %c0_i32, %c0_i32_0 : i32, i32
  }
  func.func @transform_3(%arg0: i32) -> (i32, i32) {
    %c0_i32 = arith.constant 0 : i32
    %c0_i32_0 = arith.constant 0 : i32
    %c0_i32_1 = arith.constant 0 : i32
    return %c0_i32, %c0_i32_0 : i32, i32
  }
  func.func @transform_4(%arg0: i32) -> (i32, i32) {
    %c0_i32 = arith.constant 0 : i32
    %c0_i32_0 = arith.constant 0 : i32
    %c0_i32_1 = arith.constant 0 : i32
    return %c0_i32, %c0_i32_0 : i32, i32
  }
  func.func @transform_5(%arg0: i32) -> (i32, i32) {
    %c0_i32 = arith.constant 0 : i32
    %c0_i32_0 = arith.constant 0 : i32
    return %arg0, %c0_i32 : i32, i32
  }
}

</mosaic_0001>

<bundles_post_ra>
// kernel: tpu_custom_call.1
= control target key start
LH: loop header
LB: loop body
LE: loop exit
PB: predicated region body
PF: predicated region fallthrough
CT: control target
= control target key end

     0   :  { %vm33_vm0 = vcmask 1045504   ;;  %vm29_vm1 = vcmask 48128   ;;  %v272_v0 = vmov 0.0   ;;  %vm273_vm2 = vmmov 0   ;;  %s367_s1 = inlined_call_operand.vmem [shape: f32[6,128], index: 1, kind: input, shape index: {}]   ;;  %s368_s0 = inlined_call_operand.vmem [shape: f32[8,6], index: 0, kind: input, shape index: {}]   ;;  %s369_s3 = inlined_call_operand.vmem [shape: f32[128,4], index: 3, kind: input, shape index: {}]   ;;  %s370_s2 = inlined_call_operand.vmem [shape: f32[1,128], index: 2, kind: input, shape index: {}]   ;;  %s371_s4 = inlined_call_operand.vmem [shape: f32[1,4], index: 4, kind: input, shape index: {}]   ;;  %s372_s5 = inlined_call_operand.vmem [shape: f32[8,4], index: 5, kind: output, shape index: {}]  }
   0x1   :  { %230 = vmatprep.subr.mxu0 %v272_v0  ;;  %v21_v1 = vld [vmem:[%s367_s1] sm:$0x3f]  ;;  %232 = vmatprep.mubr.msk.f32.mxu0 %vm273_vm2, %v272_v0  ;;  %v123_v3 = vld [vmem:[%s369_s3 + $0x78] sm:$0xff]  ;;  %v122_v4 = vld [vmem:[%s369_s3 + $0x70] sm:$0xff]  ;;  %vm201_vm3 = vcmask 31744  }
   0x2   :  { %v20_v2 = vld [vmem:[%s368_s0] sm:$0xff]  ;;  %231 = vmatpush3.msk.msra.mxu0 %vm33_vm0, %v21_v1  ;;  %235 = vmatprep.subr.mxu1 %v272_v0  ;;  %v121_v5 = vld [vmem:[%s369_s3 + $0x68] sm:$0xff]  ;;  %v119_v7 = vld [vmem:[%s369_s3 + $0x58] sm:$0xff] }
   0x3   :  { %233 = vmatmul.mubr.msk.f32.vlgmr.msra.gmra.mxu0 %vm29_vm1, %v20_v2  ;;  %236 = vmatpush3.msra.mxu1 %v123_v3  ;;  %v120_v6 = vld [vmem:[%s369_s3 + $0x60] sm:$0xff]  ;;  %v118_v8 = vld [vmem:[%s369_s3 + $0x50] sm:$0xff]  ;;  %v117_v9 = vld [vmem:[%s369_s3 + $0x48] sm:$0xff] }
   0x4   :  { %237 = vmatprep.subr.mxu1 %v272_v0  ;;  %267 = vmatprep.mubr.msk.f32.mxu1 %vm273_vm2, %v272_v0  ;;  %v116_v10 = vld [vmem:[%s369_s3 + $0x40] sm:$0xff]  ;;  %v115_v11 = vld [vmem:[%s369_s3 + $0x38] sm:$0xff]  ;;  %v114_v12 = vld [vmem:[%s369_s3 + $0x30] sm:$0xff] }
   0x5   :  { %238 = vmatpush3.msra.mxu1 %v122_v4  ;;  %v113_v13 = vld [vmem:[%s369_s3 + $0x28] sm:$0xff]  ;;  %v112_v14 = vld [vmem:[%s369_s3 + $0x20] sm:$0xff]  ;;  %v111_v15 = vld [vmem:[%s369_s3 + $0x18] sm:$0xff] }
   0x6   :  { %239 = vmatprep.subr.mxu1 %v272_v0  ;;  %v110_v16 = vld [vmem:[%s369_s3 + $0x10] sm:$0xff]  ;;  %v109_v17 = vld [vmem:[%s369_s3 + $0x8] sm:$0xff]  ;;  %v108_v18 = vld [vmem:[%s369_s3] sm:$0xff] }
   0x7   :  { %240 = vmatpush3.msra.mxu1 %v121_v5  ;;  %v207_v19 = vld [vmem:[%s370_s2] ss:$0 sm:$0xff] }
   0x8   :  { %241 = vmatprep.subr.mxu1 %v272_v0  ;;  %v210_v24 = vld [vmem:[%s371_s4] ss:$0 sm:$0xff] }
   0x9   :  { %242 = vmatpush3.msra.mxu1 %v120_v6 }
   0xa   :  { %243 = vmatprep.subr.mxu1 %v272_v0 }
   0xb   :  { %244 = vmatpush3.msra.mxu1 %v119_v7 }
   0xc   :  { %245 = vmatprep.subr.mxu1 %v272_v0 }
   0xd   :  { %246 = vmatpush3.msra.mxu1 %v118_v8 }
   0xe   :  { %247 = vmatprep.subr.mxu1 %v272_v0 }
   0xf   :  { %248 = vmatpush3.msra.mxu1 %v117_v9 }
  0x10   :  { %249 = vmatprep.subr.mxu1 %v272_v0 }
  0x11   :  { %250 = vmatpush3.msra.mxu1 %v116_v10 }
  0x12   :  { %251 = vmatprep.subr.mxu1 %v272_v0 }
  0x13   :  { %252 = vmatpush3.msra.mxu1 %v115_v11 }
  0x14   :  { %253 = vmatprep.subr.mxu1 %v272_v0 }
  0x15   :  { %254 = vmatpush3.msra.mxu1 %v114_v12 }
  0x16   :  { %255 = vmatprep.subr.mxu1 %v272_v0 }
  0x17   :  { %256 = vmatpush3.msra.mxu1 %v113_v13 }
  0x18   :  { %257 = vmatprep.subr.mxu1 %v272_v0 }
  0x19   :  { %258 = vmatpush3.msra.mxu1 %v112_v14 }
  0x1a   :  { %259 = vmatprep.subr.mxu1 %v272_v0 }
  0x1b   :  { %260 = vmatpush3.msra.mxu1 %v111_v15 }
  0x1c   :  { %261 = vmatprep.subr.mxu1 %v272_v0 }
  0x1d   :  { %262 = vmatpush3.msra.mxu1 %v110_v16 }
  0x1e   :  { %263 = vmatprep.subr.mxu1 %v272_v0 }
  0x1f   :  { %264 = vmatpush3.msra.mxu1 %v109_v17 }
  0x20   :  { %265 = vmatprep.subr.mxu1 %v272_v0 }
  0x21   :  { %266 = vmatpush3.msra.mxu1 %v108_v18 }
  0xc3   :  { %v103_v20 = vpop.f32.mrf.mxu0 }
  0xc4   :  { %v104_v21 = vadd.f32 %v207_v19, %v103_v20 }
  0xc5   :  { %v234_v22 = vpop.f32.mrf.mxu0 }
  0xc6   :  { %v107_v23 = vmax.f32 %v104_v21, 0.0 }
  0xc8   :  { %268 = vmatmul.mubr.f32.vlgmr.msra.gmra.mxu1 %v107_v23 }
 0x188   :  { %v197_v25 = vpop.f32.mrf.mxu1 }
 0x189   :  { %v198_v26 = vadd.f32 %v210_v24, %v197_v25 }
 0x18a   :  { %v269_v27 = vpop.f32.mrf.mxu1 }
 0x18b   :  { %202 = vst.msk [vmem:[%s372_s5] sm:$0xff] %vm201_vm3, %v198_v26 }

</bundles_post_ra>
